<compile_context>
chip_gen: v7x
topology: tpu7x:2x2x1
jax: 0.10.0
libtpu: 0.0.40
codegen_flags: <defaults>
</compile_context>

<pallas_src>
import functools

import jax
import jax.numpy as jnp
from jax.experimental import pallas as pl
from jax.experimental.pallas import tpu as pltpu

EPS = 1e-5


def _bottleneck_kernel(x_ref,
                       w1_ref, g1_ref, bt1_ref,
                       w2_ref, g2_ref, bt2_ref,
                       o_ref, *, kernel_size, length, mm_dtype):
    C, NL = x_ref.shape
    L = length
    K = kernel_size
    p_left = (K - 1) // 2
    p_right = K - 1 - p_left
    blk = pl.program_id(0)

    # Activation is carried across grid iterations in the resident output
    # block (same block index every step -> stays in VMEM, one HBM writeback).
    @pl.when(blk == 0)
    def _():
        o_ref[...] = x_ref[...]

    # Lane position within each sample, generated in-kernel (no HBM pos array).
    pos = jax.lax.broadcasted_iota(jnp.int32, (C, NL), 1) % L
    # Hoisted edge masks: computed once per grid step, reused by both convs.
    right_masks = [pos == (L - 1 - j) for j in range(p_right)]
    left_masks = [pos == j for j in range(p_left)]

    def roll_lanes(v, shift):
        shift = shift % NL                   # normalize to non-negative shift
        if shift == 0:
            return v
        return pltpu.roll(v, shift=shift, axis=1)   # XLU, jnp.roll semantics

    def tap_shift(v, d):
        """s[c, n*L + l] = v[c, n*L + reflect(l + d)] (reflect at sample edges)."""
        if d == 0:
            return v
        s = roll_lanes(v, -d)                # s[f] = v[f + d] (mod N*L)
        if d > 0:                            # right edge: l + d > L - 1
            for j in range(d):               # l = L-1-j needs v[.., L-1+j-d]
                fix = roll_lanes(v, d - 2 * j)
                s = jnp.where(right_masks[j], fix, s)
        else:                                # left edge: l + d < 0
            for j in range(-d):              # l = j needs v[.., -(j + d)]
                fix = roll_lanes(v, 2 * j + d)
                s = jnp.where(left_masks[j], fix, s)
        return s

    def conv1d(v_f32, w2d):
        # Single MXU matmul per conv: (C, K*C) x (K*C, NL), f32 accumulation.
        v = v_f32.astype(mm_dtype)           # cast once; shifts run packed
        parts = [tap_shift(v, k - p_left) for k in range(K)]
        stacked = parts[0] if K == 1 else jnp.concatenate(parts, axis=0)
        return jnp.dot(w2d, stacked, preferred_element_type=jnp.float32)
        # (conv bias omitted: cancels exactly under training-mode BN mean sub)

    def bn(v, gamma, beta):
        # Training-mode BatchNorm over (N, L), biased variance, centered form.
        mean = jnp.mean(v, axis=1, keepdims=True)            # (C, 1)
        xc = v - mean
        var = jnp.mean(xc * xc, axis=1, keepdims=True)       # (C, 1)
        scale = gamma * jax.lax.rsqrt(var + EPS)
        return xc * scale + beta

    resid = o_ref[...].astype(jnp.float32)
    h = conv1d(resid, w1_ref[0])
    h = jnp.maximum(bn(h, g1_ref[0], bt1_ref[0]), 0.0)
    h = conv1d(h, w2_ref[0])
    out = jnp.maximum(bn(h, g2_ref[0], bt2_ref[0]) + resid, 0.0)
    o_ref[...] = out.astype(o_ref.dtype)


def bottleneck(x, block_params, kernel_size, *, matmul_dtype=jnp.bfloat16):
    """x: (N, C, L) float32 (PyTorch NCL layout). Returns (N, C, L)."""
    N, C, L = x.shape
    K = kernel_size
    n_blocks = len(block_params)
    p_left = (K - 1) // 2
    p_right = K - 1 - p_left
    assert p_left <= L - 1 and p_right <= L - 1, "reflect pad needs K <= 2L-1"
    NL = N * L

    def stack(i):
        return jnp.stack([p[i] for p in block_params], axis=0)

    # (B, Cout, Cin, K) -> (B, Cout, K, Cin) -> (B, Cout, K*Cin): tap-major
    # contraction layout matching the in-kernel stacked operand; cast once.
    w1 = jnp.transpose(stack(0), (0, 1, 3, 2)).reshape(
        n_blocks, C, K * C).astype(matmul_dtype)
    w2 = jnp.transpose(stack(4), (0, 1, 3, 2)).reshape(
        n_blocks, C, K * C).astype(matmul_dtype)
    # Conv biases (stack(1)/stack(5)) cancel exactly under training-mode BN
    # mean subtraction -> not passed to the kernel (2 fewer DMA'd inputs).
    g1 = stack(2).reshape(n_blocks, C, 1).astype(jnp.float32)
    bt1 = stack(3).reshape(n_blocks, C, 1).astype(jnp.float32)
    g2 = stack(6).reshape(n_blocks, C, 1).astype(jnp.float32)
    bt2 = stack(7).reshape(n_blocks, C, 1).astype(jnp.float32)

    # Lane-dense activation layout: (N, C, L) -> (C, N*L).
    x2d = jnp.transpose(x, (1, 0, 2)).reshape(C, NL)

    kern = functools.partial(_bottleneck_kernel, kernel_size=K, length=L,
                             mm_dtype=matmul_dtype)

    # Scoped-VMEM budget sized to the live working set (default 16/32 MiB can
    # OOM first); clamped to 64 MiB so it is valid on v7x too.
    mm_bytes = jnp.dtype(matmul_dtype).itemsize
    act_bytes = C * NL * 4
    work = (8 * act_bytes                       # ~live f32 temporaries
            + 3 * K * C * NL * mm_bytes         # stacked tap operand + shifts
            + 4 * (2 * C * K * C * mm_bytes)    # double-buffered conv weights
            + 4 * (4 * C * 128 * 4))            # BN params (lane-padded)
    vmem_limit = int(min(64 * 1024 * 1024, max(32 * 1024 * 1024, 2 * work)))

    out2d = pl.pallas_call(
        kern,
        out_shape=jax.ShapeDtypeStruct((C, NL), x.dtype),
        grid_spec=pltpu.PrefetchScalarGridSpec(
            num_scalar_prefetch=0,
            grid=(n_blocks,),
            in_specs=[
                pl.BlockSpec((C, NL), lambda b: (0, 0)),            # x (resident)
                pl.BlockSpec((1, C, K * C), lambda b: (b, 0, 0)),   # w1[b]
                pl.BlockSpec((1, C, 1), lambda b: (b, 0, 0)),       # g1[b]
                pl.BlockSpec((1, C, 1), lambda b: (b, 0, 0)),       # bt1[b]
                pl.BlockSpec((1, C, K * C), lambda b: (b, 0, 0)),   # w2[b]
                pl.BlockSpec((1, C, 1), lambda b: (b, 0, 0)),       # g2[b]
                pl.BlockSpec((1, C, 1), lambda b: (b, 0, 0)),       # bt2[b]
            ],
            out_specs=pl.BlockSpec((C, NL), lambda b: (0, 0)),      # carry/out
        ),
        compiler_params=pltpu.CompilerParams(
            dimension_semantics=("arbitrary",),
            vmem_limit_bytes=vmem_limit),
    )(x2d, w1, g1, bt1, w2, g2, bt2)
    return jnp.transpose(out2d.reshape(C, N, L), (1, 0, 2))


def init_block_params(key, channels, kernel_size):
    ks = jax.random.split(key, 4)
    bound = 1.0 / (channels * kernel_size) ** 0.5
    w1 = jax.random.uniform(ks[0], (channels, channels, kernel_size),
                            jnp.float32, -bound, bound)
    b1 = jax.random.uniform(ks[1], (channels,), jnp.float32, -bound, bound)
    w2 = jax.random.uniform(ks[2], (channels, channels, kernel_size),
                            jnp.float32, -bound, bound)
    b2 = jax.random.uniform(ks[3], (channels,), jnp.float32, -bound, bound)
    g1 = jnp.ones((channels,), jnp.float32)
    bt1 = jnp.zeros((channels,), jnp.float32)
    g2 = jnp.ones((channels,), jnp.float32)
    bt2 = jnp.zeros((channels,), jnp.float32)
    return (w1, b1, g1, bt1, w2, b2, g2, bt2)


# ---------------- pure-JAX reference (for correctness check) ----------------
def _ref_block(x, params, kernel_size, conv_dtype=jnp.float32):
    w1, b1, g1, bt1, w2, b2, g2, bt2 = params
    K = kernel_size
    p_left = (K - 1) // 2
    p_right = K - 1 - p_left

    def conv(v, w, b):
        vp = jnp.pad(v, ((0, 0), (0, 0), (p_left, p_right)), mode='reflect')
        out = jax.lax.conv_general_dilated(
            vp.astype(conv_dtype), w.astype(conv_dtype),
            window_strides=(1,), padding='VALID',
            dimension_numbers=('NCH', 'OIH', 'NCH'),
            preferred_element_type=jnp.float32)
        return out + b[None, :, None]

    def bn(v, g, bt):
        m = jnp.mean(v, axis=(0, 2), keepdims=True)
        var = jnp.mean((v - m) ** 2, axis=(0, 2), keepdims=True)
        return (v - m) / jnp.sqrt(var + EPS) * g[None, :, None] + bt[None, :, None]

    out = jax.nn.relu(bn(conv(x, w1, b1), g1, bt1))
    out = bn(conv(out, w2, b2), g2, bt2) + x
    return jax.nn.relu(out)


def _ref_bottleneck(x, block_params, kernel_size, conv_dtype=jnp.float32):
    out = x
    for p in block_params:
        out = _ref_block(out, p, kernel_size, conv_dtype)
    return out


if __name__ == "__main__":
    N, C, L = 2, 16, 64       # batch, channels, length -> N*L = 128 lanes
    kernel_size = 3
    stride = 1                # padding='same' forces stride=1 in PyTorch
    n_blocks = 2

    key = jax.random.PRNGKey(0)
    kx, kp = jax.random.split(key)
    x = jax.random.normal(kx, (N, C, L), jnp.float32)

    block_keys = jax.random.split(kp, n_blocks)
    block_params = [init_block_params(k, C, kernel_size) for k in block_keys]

    # f32-matmul path: tight check against the pure-JAX f32 reference.
    out_f32 = jax.block_until_ready(
        bottleneck(x, block_params, kernel_size, matmul_dtype=jnp.float32))
    ref_f32 = _ref_bottleneck(x, block_params, kernel_size, jnp.float32)
    assert out_f32.shape == x.shape and out_f32.dtype == x.dtype
    assert jnp.allclose(out_f32, ref_f32, atol=1e-4, rtol=1e-4), (
        float(jnp.max(jnp.abs(out_f32 - ref_f32))))

    # bf16-matmul path (default; native MXU rate on v6e/v7x, f32 accumulation):
    # checked against a reference whose conv operands are also bf16.
    out_bf16 = jax.block_until_ready(bottleneck(x, block_params, kernel_size))
    ref_bf16 = _ref_bottleneck(x, block_params, kernel_size, jnp.bfloat16)
    assert jnp.allclose(out_bf16, ref_bf16, atol=2e-2, rtol=2e-2), (
        float(jnp.max(jnp.abs(out_bf16 - ref_bf16))))

    print("KERNEL_OK")
</pallas_src>

<mosaic_0001>
module attributes {stable_mosaic.version = 11 : i64} {
  func.func @_bottleneck_kernel(%arg0: i32, %arg1: memref<16x128xf32, #tpu.memory_space<vmem>>, %arg2: memref<1x16x48xf32, #tpu.memory_space<vmem>>, %arg3: memref<1x16x1xf32, #tpu.memory_space<vmem>>, %arg4: memref<1x16x1xf32, #tpu.memory_space<vmem>>, %arg5: memref<1x16x48xf32, #tpu.memory_space<vmem>>, %arg6: memref<1x16x1xf32, #tpu.memory_space<vmem>>, %arg7: memref<1x16x1xf32, #tpu.memory_space<vmem>>, %arg8: memref<16x128xf32, #tpu.memory_space<vmem>>) attributes {dimension_semantics = [#tpu.dimension_semantics<arbitrary>], iteration_bounds = array<i64: 2>, scalar_prefetch = 0 : i64, scratch_operands = 0 : i64, tpu.core_type = #tpu.core_type<tc>, window_params = [{pipeline_mode = #tpu.pipeline_mode<synchronous>, transform_indices = @transform_0, window_bounds = array<i64: 16, 128>}, {transform_indices = @transform_1, window_bounds = array<i64: 1, 16, 48>}, {transform_indices = @transform_2, window_bounds = array<i64: 1, 16, 1>}, {transform_indices = @transform_3, window_bounds = array<i64: 1, 16, 1>}, {transform_indices = @transform_4, window_bounds = array<i64: 1, 16, 48>}, {transform_indices = @transform_5, window_bounds = array<i64: 1, 16, 1>}, {transform_indices = @transform_6, window_bounds = array<i64: 1, 16, 1>}, {pipeline_mode = #tpu.pipeline_mode<synchronous>, transform_indices = @transform_7, window_bounds = array<i64: 16, 128>}]} {
    %c0_i32 = arith.constant 0 : i32
    %0 = arith.cmpi eq, %arg0, %c0_i32 : i32
    %1 = arith.extui %0 : i1 to i32
    %c0_i32_0 = arith.constant 0 : i32
    %2 = arith.cmpi ne, %1, %c0_i32_0 : i32
    scf.if %2 {
      %c0_47 = arith.constant 0 : index
      %c0_48 = arith.constant 0 : index
      %97 = vector.load %arg1[%c0_47, %c0_48] : memref<16x128xf32, #tpu.memory_space<vmem>>, vector<16x128xf32>
      %c0_49 = arith.constant 0 : index
      %c0_50 = arith.constant 0 : index
      %98 = vector.load %arg8[%c0_49, %c0_50] : memref<16x128xf32, #tpu.memory_space<vmem>>, vector<16x128xf32>
      tpu.vector_store %arg8[%c0_49, %c0_50], %97 {strides = array<i32>} : memref<16x128xf32, #tpu.memory_space<vmem>>, vector<16x128xf32>,
    } else {
    }
    %3 = tpu.iota {dimensions = array<i32: 1>} : vector<16x128xi32>
    %c64_i32 = arith.constant 64 : i32
    %c0_i32_1 = arith.constant 0 : i32
    %4 = arith.cmpi eq, %c64_i32, %c0_i32_1 : i32
    %c1_i32 = arith.constant 1 : i32
    %5 = arith.select %4, %c1_i32, %c64_i32 : i32
    %6 = vector.broadcast %5 : i32 to vector<16x128xi32>
    %7 = arith.remsi %3, %6 : vector<16x128xi32>
    %c0_i32_2 = arith.constant 0 : i32
    %8 = vector.broadcast %c0_i32_2 : i32 to vector<16x128xi32>
    %9 = arith.cmpi ne, %7, %8 : vector<16x128xi32>
    %c0_i32_3 = arith.constant 0 : i32
    %10 = vector.broadcast %c0_i32_3 : i32 to vector<16x128xi32>
    %11 = arith.cmpi slt, %7, %10 : vector<16x128xi32>
    %c0_i32_4 = arith.constant 0 : i32
    %12 = arith.cmpi slt, %5, %c0_i32_4 : i32
    %13 = vector.broadcast %12 : i1 to vector<16x128xi1>
    %14 = vector.broadcast %13 : vector<16x128xi1> to vector<16x128xi1>
    %15 = arith.xori %11, %14 : vector<16x128xi1>
    %16 = arith.andi %15, %9 : vector<16x128xi1>
    %17 = vector.broadcast %5 : i32 to vector<16x128xi32>
    %18 = arith.addi %7, %17 : vector<16x128xi32>
    %19 = arith.select %16, %18, %7 : vector<16x128xi1>, vector<16x128xi32>
    %c63_i32 = arith.constant 63 : i32
    %20 = vector.broadcast %c63_i32 : i32 to vector<16x128xi32>
    %21 = arith.cmpi eq, %19, %20 : vector<16x128xi32>
    %c0_i32_5 = arith.constant 0 : i32
    %22 = vector.broadcast %c0_i32_5 : i32 to vector<16x128xi32>
    %23 = arith.cmpi eq, %19, %22 : vector<16x128xi32>
    %c0 = arith.constant 0 : index
    %c0_6 = arith.constant 0 : index
    %24 = vector.load %arg8[%c0, %c0_6] : memref<16x128xf32, #tpu.memory_space<vmem>>, vector<16x128xf32>
    %c0_7 = arith.constant 0 : index
    %c0_8 = arith.constant 0 : index
    %c0_9 = arith.constant 0 : index
    %25 = vector.load %arg2[%c0_7, %c0_8, %c0_9] : memref<1x16x48xf32, #tpu.memory_space<vmem>>, vector<1x16x48xf32>
    %26 = vector.shape_cast %25 : vector<1x16x48xf32> to vector<16x48xf32>
    %c1_i32_10 = arith.constant 1 : i32
    %27 = tpu.dynamic_rotate %24 by %c1_i32_10 dim 1 : vector<16x128xf32>, i32 -> vector<16x128xf32>
    %c127_i32 = arith.constant 127 : i32
    %28 = tpu.dynamic_rotate %24 by %c127_i32 dim 1 : vector<16x128xf32>, i32 -> vector<16x128xf32>
    %29 = arith.select %23, %28, %27 : vector<16x128xi1>, vector<16x128xf32>
    %c127_i32_11 = arith.constant 127 : i32
    %30 = tpu.dynamic_rotate %24 by %c127_i32_11 dim 1 : vector<16x128xf32>, i32 -> vector<16x128xf32>
    %c1_i32_12 = arith.constant 1 : i32
    %31 = tpu.dynamic_rotate %24 by %c1_i32_12 dim 1 : vector<16x128xf32>, i32 -> vector<16x128xf32>
    %32 = arith.select %21, %31, %30 : vector<16x128xi1>, vector<16x128xf32>
    %33 = tpu.concatenate %29, %24, %32 in 0 : vector<16x128xf32>, vector<16x128xf32>, vector<16x128xf32> -> vector<48x128xf32>
    %cst = arith.constant dense<0.000000e+00> : vector<16x128xf32>
    %34 = tpu.matmul %26, %33, %cst {dimension_numbers = #tpu.dot_dimension_numbers<[1], [0], [0], [1], [0, 0, 1, 1], [], []>} : vector<16x48xf32>, vector<48x128xf32>, vector<16x128xf32> -> vector<16x128xf32>
    %c0_13 = arith.constant 0 : index
    %c0_14 = arith.constant 0 : index
    %c0_15 = arith.constant 0 : index
    %35 = vector.load %arg3[%c0_13, %c0_14, %c0_15] : memref<1x16x1xf32, #tpu.memory_space<vmem>>, vector<1x16x1xf32>
    %36 = vector.shape_cast %35 : vector<1x16x1xf32> to vector<16x1xf32>
    %c0_16 = arith.constant 0 : index
    %c0_17 = arith.constant 0 : index
    %c0_18 = arith.constant 0 : index
    %37 = vector.load %arg4[%c0_16, %c0_17, %c0_18] : memref<1x16x1xf32, #tpu.memory_space<vmem>>, vector<1x16x1xf32>
    %38 = vector.shape_cast %37 : vector<1x16x1xf32> to vector<16x1xf32>
    %cst_19 = arith.constant dense<0.000000e+00> : vector<16xf32>
    %39 = vector.multi_reduction <add>, %34, %cst_19 [1] : vector<16x128xf32> to vector<16xf32>
    %40 = vector.shape_cast %39 : vector<16xf32> to vector<16x1xf32>
    %cst_20 = arith.constant 1.280000e+02 : f32
    %41 = vector.broadcast %cst_20 : f32 to vector<16x1xf32>
    %42 = arith.divf %40, %41 : vector<16x1xf32>
    %43 = vector.broadcast %42 : vector<16x1xf32> to vector<16x128xf32>
    %44 = arith.subf %34, %43 : vector<16x128xf32>
    %45 = arith.mulf %44, %44 : vector<16x128xf32>
    %cst_21 = arith.constant dense<0.000000e+00> : vector<16xf32>
    %46 = vector.multi_reduction <add>, %45, %cst_21 [1] : vector<16x128xf32> to vector<16xf32>
    %47 = vector.shape_cast %46 : vector<16xf32> to vector<16x1xf32>
    %cst_22 = arith.constant 1.280000e+02 : f32
    %48 = vector.broadcast %cst_22 : f32 to vector<16x1xf32>
    %49 = arith.divf %47, %48 : vector<16x1xf32>
    %cst_23 = arith.constant 9.99999974E-6 : f32
    %50 = vector.broadcast %cst_23 : f32 to vector<16x1xf32>
    %51 = arith.addf %49, %50 : vector<16x1xf32>
    %52 = math.rsqrt %51 : vector<16x1xf32>
    %53 = arith.mulf %36, %52 : vector<16x1xf32>
    %54 = vector.broadcast %53 : vector<16x1xf32> to vector<16x128xf32>
    %55 = arith.mulf %44, %54 : vector<16x128xf32>
    %56 = vector.broadcast %38 : vector<16x1xf32> to vector<16x128xf32>
    %57 = arith.addf %55, %56 : vector<16x128xf32>
    %cst_24 = arith.constant 0.000000e+00 : f32
    %58 = vector.broadcast %cst_24 : f32 to vector<16x128xf32>
    %59 = arith.maximumf %57, %58 : vector<16x128xf32>
    %c0_25 = arith.constant 0 : index
    %c0_26 = arith.constant 0 : index
    %c0_27 = arith.constant 0 : index
    %60 = vector.load %arg5[%c0_25, %c0_26, %c0_27] : memref<1x16x48xf32, #tpu.memory_space<vmem>>, vector<1x16x48xf32>
    %61 = vector.shape_cast %60 : vector<1x16x48xf32> to vector<16x48xf32>
    %c1_i32_28 = arith.constant 1 : i32
    %62 = tpu.dynamic_rotate %59 by %c1_i32_28 dim 1 : vector<16x128xf32>, i32 -> vector<16x128xf32>
    %c127_i32_29 = arith.constant 127 : i32
    %63 = tpu.dynamic_rotate %59 by %c127_i32_29 dim 1 : vector<16x128xf32>, i32 -> vector<16x128xf32>
    %64 = arith.select %23, %63, %62 : vector<16x128xi1>, vector<16x128xf32>
    %c127_i32_30 = arith.constant 127 : i32
    %65 = tpu.dynamic_rotate %59 by %c127_i32_30 dim 1 : vector<16x128xf32>, i32 -> vector<16x128xf32>
    %c1_i32_31 = arith.constant 1 : i32
    %66 = tpu.dynamic_rotate %59 by %c1_i32_31 dim 1 : vector<16x128xf32>, i32 -> vector<16x128xf32>
    %67 = arith.select %21, %66, %65 : vector<16x128xi1>, vector<16x128xf32>
    %68 = tpu.concatenate %64, %59, %67 in 0 : vector<16x128xf32>, vector<16x128xf32>, vector<16x128xf32> -> vector<48x128xf32>
    %cst_32 = arith.constant dense<0.000000e+00> : vector<16x128xf32>
    %69 = tpu.matmul %61, %68, %cst_32 {dimension_numbers = #tpu.dot_dimension_numbers<[1], [0], [0], [1], [0, 0, 1, 1], [], []>} : vector<16x48xf32>, vector<48x128xf32>, vector<16x128xf32> -> vector<16x128xf32>
    %c0_33 = arith.constant 0 : index
    %c0_34 = arith.constant 0 : index
    %c0_35 = arith.constant 0 : index
    %70 = vector.load %arg6[%c0_33, %c0_34, %c0_35] : memref<1x16x1xf32, #tpu.memory_space<vmem>>, vector<1x16x1xf32>
    %71 = vector.shape_cast %70 : vector<1x16x1xf32> to vector<16x1xf32>
    %c0_36 = arith.constant 0 : index
    %c0_37 = arith.constant 0 : index
    %c0_38 = arith.constant 0 : index
    %72 = vector.load %arg7[%c0_36, %c0_37, %c0_38] : memref<1x16x1xf32, #tpu.memory_space<vmem>>, vector<1x16x1xf32>
    %73 = vector.shape_cast %72 : vector<1x16x1xf32> to vector<16x1xf32>
    %cst_39 = arith.constant dense<0.000000e+00> : vector<16xf32>
    %74 = vector.multi_reduction <add>, %69, %cst_39 [1] : vector<16x128xf32> to vector<16xf32>
    %75 = vector.shape_cast %74 : vector<16xf32> to vector<16x1xf32>
    %cst_40 = arith.constant 1.280000e+02 : f32
    %76 = vector.broadcast %cst_40 : f32 to vector<16x1xf32>
    %77 = arith.divf %75, %76 : vector<16x1xf32>
    %78 = vector.broadcast %77 : vector<16x1xf32> to vector<16x128xf32>
    %79 = arith.subf %69, %78 : vector<16x128xf32>
    %80 = arith.mulf %79, %79 : vector<16x128xf32>
    %cst_41 = arith.constant dense<0.000000e+00> : vector<16xf32>
    %81 = vector.multi_reduction <add>, %80, %cst_41 [1] : vector<16x128xf32> to vector<16xf32>
    %82 = vector.shape_cast %81 : vector<16xf32> to vector<16x1xf32>
    %cst_42 = arith.constant 1.280000e+02 : f32
    %83 = vector.broadcast %cst_42 : f32 to vector<16x1xf32>
    %84 = arith.divf %82, %83 : vector<16x1xf32>
    %cst_43 = arith.constant 9.99999974E-6 : f32
    %85 = vector.broadcast %cst_43 : f32 to vector<16x1xf32>
    %86 = arith.addf %84, %85 : vector<16x1xf32>
    %87 = math.rsqrt %86 : vector<16x1xf32>
    %88 = arith.mulf %71, %87 : vector<16x1xf32>
    %89 = vector.broadcast %88 : vector<16x1xf32> to vector<16x128xf32>
    %90 = arith.mulf %79, %89 : vector<16x128xf32>
    %91 = vector.broadcast %73 : vector<16x1xf32> to vector<16x128xf32>
    %92 = arith.addf %90, %91 : vector<16x128xf32>
    %93 = arith.addf %92, %24 : vector<16x128xf32>
    %cst_44 = arith.constant 0.000000e+00 : f32
    %94 = vector.broadcast %cst_44 : f32 to vector<16x128xf32>
    %95 = arith.maximumf %93, %94 : vector<16x128xf32>
    %c0_45 = arith.constant 0 : index
    %c0_46 = arith.constant 0 : index
    %96 = vector.load %arg8[%c0_45, %c0_46] : memref<16x128xf32, #tpu.memory_space<vmem>>, vector<16x128xf32>
    tpu.vector_store %arg8[%c0_45, %c0_46], %95 {strides = array<i32>} : memref<16x128xf32, #tpu.memory_space<vmem>>, vector<16x128xf32>,
    return
  }
  func.func @transform_0(%arg0: i32) -> (i32, i32) {
    %c0_i32 = arith.constant 0 : i32
    %c0_i32_0 = arith.constant 0 : i32
    %c0_i32_1 = arith.constant 0 : i32
    return %c0_i32, %c0_i32_0 : i32, i32
  }
  func.func @transform_1(%arg0: i32) -> (i32, i32, i32) {
    %c0_i32 = arith.constant 0 : i32
    %c0_i32_0 = arith.constant 0 : i32
    %c0_i32_1 = arith.constant 0 : i32
    return %arg0, %c0_i32, %c0_i32_0 : i32, i32, i32
  }
  func.func @transform_2(%arg0: i32) -> (i32, i32, i32) {
    %c0_i32 = arith.constant 0 : i32
    %c0_i32_0 = arith.constant 0 : i32
    %c0_i32_1 = arith.constant 0 : i32
    return %arg0, %c0_i32, %c0_i32_0 : i32, i32, i32
  }
  func.func @transform_3(%arg0: i32) -> (i32, i32, i32) {
    %c0_i32 = arith.constant 0 : i32
    %c0_i32_0 = arith.constant 0 : i32
    %c0_i32_1 = arith.constant 0 : i32
    return %arg0, %c0_i32, %c0_i32_0 : i32, i32, i32
  }
  func.func @transform_4(%arg0: i32) -> (i32, i32, i32) {
    %c0_i32 = arith.constant 0 : i32
    %c0_i32_0 = arith.constant 0 : i32
    %c0_i32_1 = arith.constant 0 : i32
    return %arg0, %c0_i32, %c0_i32_0 : i32, i32, i32
  }
  func.func @transform_5(%arg0: i32) -> (i32, i32, i32) {
    %c0_i32 = arith.constant 0 : i32
    %c0_i32_0 = arith.constant 0 : i32
    %c0_i32_1 = arith.constant 0 : i32
    return %arg0, %c0_i32, %c0_i32_0 : i32, i32, i32
  }
  func.func @transform_6(%arg0: i32) -> (i32, i32, i32) {
    %c0_i32 = arith.constant 0 : i32
    %c0_i32_0 = arith.constant 0 : i32
    %c0_i32_1 = arith.constant 0 : i32
    return %arg0, %c0_i32, %c0_i32_0 : i32, i32, i32
  }
  func.func @transform_7(%arg0: i32) -> (i32, i32) {
    %c0_i32 = arith.constant 0 : i32
    %c0_i32_0 = arith.constant 0 : i32
    %c0_i32_1 = arith.constant 0 : i32
    return %c0_i32, %c0_i32_0 : i32, i32
  }
}

</mosaic_0001>

<bundles_post_ra>
// kernel: tpu_custom_call.1
= control target key start
LH: loop header
LB: loop body
LE: loop exit
PB: predicated region body
PF: predicated region fallthrough
CT: control target
= control target key end

     0   :  { %12 = vsyncpa [#allocation3], 0  ;;  %s1034_s24 = smov 0   ;;  %s1163_s0 = inlined_call_operand.vmem [shape: f32[16,128], index: 0, kind: input, shape index: {}]   ;;  %s1164_s1 = inlined_call_operand.vmem [shape: f32[2,16,48], index: 1, kind: input, shape index: {}]   ;;  %s1165_s2 = inlined_call_operand.vmem [shape: f32[2,16,1], index: 2, kind: input, shape index: {}]   ;;  %s1166_s3 = inlined_call_operand.vmem [shape: f32[2,16,1], index: 3, kind: input, shape index: {}]   ;;  %s1167_s4 = inlined_call_operand.vmem [shape: f32[2,16,48], index: 4, kind: input, shape index: {}]   ;;  %s1168_s5 = inlined_call_operand.vmem [shape: f32[2,16,1], index: 5, kind: input, shape index: {}]   ;;  %s1169_s6 = inlined_call_operand.vmem [shape: f32[2,16,1], index: 6, kind: input, shape index: {}]   ;;  %s1170_s7 = inlined_call_operand.hbm [shape: f32[16,128], index: 7, kind: output, shape index: {}]  }
   0x1 LB: > { %s1040_s25 = sadd.s32 4294967295, %s986_s24   ;;  %p802_p0 = scmp.ge.s32.totalorder %s986_s24, 1  ;;  %s986_s24 = sphi %s1034_s24, %s18_s24  }
   0x2   : > { %p283_p1 = scmp.lt.s32.totalorder %s986_s24, 3 }
   0x4   : > { %p284_p2 = pnand %p802_p0, %p283_p1 }
   0x5   : > { %p335_p3 = scmp.lt.s32.totalorder (!%p284_p2), %s1040_s25, 1  ;;  %p815_p4 = scmp.ne.s32.totalorder (!%p284_p2), %s1040_s25, 0 }
   0x6   : > { %287 = sbr.rel (%p284_p2) target bundleno = 1635 (0x663), region = 48 }
   0xd   : > { %s336_s26 = scalar_select %p335_p3, %s1040_s25, 1 }
   0xe   : > { %368 = sbr.rel (%p815_p4) target bundleno = 21 (0x15), region = 52  ;;  %v369_v0 = vld [vmem:[%s1163_s0] sm:$0xff] (!%p815_p4)  ;;  %v370_v1 = vld [vmem:[%s1163_s0 + $0x8] sm:$0xff] (!%p815_p4) }
   0xf   : > { %s824_s27 = sshll.u32 %s336_s26, 4  ;;  %371 = vst [vmem:[#allocation2] sm:$0xff] (!%p815_p4), %v369_v0  ;;  %372 = vst [vmem:[#allocation2 + $0x8] sm:$0xff] (!%p815_p4), %v370_v1 }
  0x10   : > { %s1049_s30 = scalar_lea.vmem %s1164_s1, %s824_s27  ;;  %s1054_s10 = scalar_lea.vmem %s1165_s2, %s824_s27 }
  0x11   : > { %s1059_s13 = scalar_lea.vmem %s1166_s3, %s824_s27  ;;  %s1064_s16 = scalar_lea.vmem %s1167_s4, %s824_s27 }
  0x12   : > { %s1069_s19 = scalar_lea.vmem %s1168_s5, %s824_s27  ;;  %s1074_s22 = scalar_lea.vmem %s1169_s6, %s824_s27 }
  0x15 PF: > { %s988_s27 = smov 1   ;;  %s989_s8 = smov 127   ;;  %v391_v5 = vld [vmem:[%s1049_s30] sm:$0xff]  ;;  %vm405_vm0 = vcmask 392192   ;;  %v373_v6 = vlaneseq  ;;  %v392_v24 = vld [vmem:[%s1049_s30 + $0x8] sm:$0xff]  ;;  %v990_v36 = vmov 0  }
  0x16   : > { %v1083_v2 = vld [vmem:[#allocation2] sm:$0xff]  ;;  %v1085_v3 = vld [vmem:[#allocation2 + $0x8] sm:$0xff]  ;;  %858 = vmatprep.mubr.msk.f32.mxu0 %vm405_vm0, %v391_v5  ;;  %930 = vset.pattern.permute.xlu1 %v990_v36  ;;  %s991_s30 = smov [#allocation2]   ;;  %p904_p5 = scmp.eq.s32.totalorder %s1040_s25, 1 }
  0x17   : > { %v920_v4 = vpack.i.bf16 %v1085_v3, %v1083_v2  ;;  %v374_v7 = vand.u32 127, %v373_v6  ;;  %v880_v19 = vpack.c.bf16 %v1085_v3, %v1083_v2  ;;  %v489_v35 = vld [vmem:[%s1059_s13] sm:$0xff]  ;;  %941 = vset.pattern.permute.xlu0 %v990_v36  ;;  %v488_v43 = vld [vmem:[%s1054_s10 + $0x8] sm:$0xff]  ;;  %s697_s9 = sshll.u32 %s991_s30, 4  ;;  %s698_s9 = int_to_ptr.vmem [resolvable:$true] %s697_s9 }
  0x18   : > { %v487_v47 = vld [vmem:[%s1054_s10] sm:$0xff]  ;;  %v490_v49 = vld [vmem:[%s1059_s13 + $0x8] sm:$0xff]  ;;  %s950_s10 = scalar_lea.vmem %s698_s9, 256  ;;  %p957_p9 = scmp.lt.s32.totalorder %s698_s9, %s698_s9 }
  0x19   : > { %921 = vrot.lane.b32.xlu0 %v920_v4, %s988_s27  ;;  %v379_v9 = vand.u32 63, %v374_v7  ;;  %v540_v62 = vld [vmem:[%s1064_s16] sm:$0xff]  ;;  %v638_v36 = vld [vmem:[%s1074_s22 + $0x8] sm:$0xff]  ;;  %p951_p6 = scmp.ne.s32.totalorder %s698_s9, %s950_s10  ;;  %p958_p10 = scmp.lt.s32.totalorder %s950_s10, %s950_s10 }
  0x1a   : > { %873 = vmatprep.mubr.msk.f32.mxu1 %vm405_vm0, %v540_v62 }
  0x1b   : > { %vm1093_vm1 = vcmp.eq.s32.totalorder %v379_v9, 0  ;;  %vm1103_vm2 = vcmp.eq.s32.totalorder %v379_v9, 63  ;;  %p952_p7 = pnand %p951_p6, %p904_p5  ;;  %p959_p11 = por %p958_p10, %p957_p9 }
  0x1d   : > { %926 = vrot.lane.b32.xlu0 %v920_v4, %s989_s8  ;;  %p953_p8 = pneg %p952_p7 }
  0x1f   : > { %p960_p12 = pnand %p959_p11, %p953_p8 }
  0x8b   : > { %v922_v8 = vpop.permute.xlu0 %921 }
  0x8c   : > { %v924_v12 = vunpack.i.h.bf16 %v922_v8  ;;  %v923_v13 = vunpack.i.l.bf16 %v922_v8 }
  0x8f   : > { %v927_v10 = vpop.permute.xlu0 %926 }
  0x90   : > { %v929_v14 = vunpack.i.h.bf16 %v927_v10  ;;  %v928_v15 = vunpack.i.l.bf16 %v927_v10 }
  0x92   : > { %v401_v16 = vsel %vm1093_vm1, %v928_v15, %v923_v13  ;;  %v402_v17 = vsel %vm1093_vm1, %v929_v14, %v924_v12  ;;  %v403_v21 = vsel %vm1103_vm2, %v923_v13, %v928_v15  ;;  %v404_v22 = vsel %vm1103_vm2, %v924_v12, %v929_v14  ;;  %v541_v14 = vld [vmem:[%s1064_s16 + $0x8] sm:$0xff] }
  0x93   : > { %v876_v18 = vpack.c.bf16 %v402_v17, %v401_v16  ;;  %v884_v23 = vpack.c.bf16 %v404_v22, %v403_v21 }
  0x95   : > { %877 = vmatprep.subr.bf16.mxu0 %v876_v18 }
  0x96   : > { %879 = vmatpush3.bf16.msra.mxu0 %v876_v18 }
  0x97   : > { %881 = vmatprep.subr.bf16.mxu0 %v880_v19 }
  0x9a   : > { %883 = vmatpush3.bf16.msra.mxu0 %v880_v19 }
  0x9b   : > { %885 = vmatprep.subr.bf16.mxu0 %v884_v23 }
  0x9e   : > { %887 = vmatpush3.bf16.msra.mxu0 %v884_v23 }
  0xa1   : > { %859 = vmatmul.mubr.msk.f32.vlgmr.msra.gmra.mrb[0].mxu0 %vm405_vm0, %v392_v24  ;;  %v637_v24 = vld [vmem:[%s1074_s22] sm:$0xff] }
 0x174   : > { %v860_v25 = vpop.f32.mrb[0].mxu0 }
 0x175   : > { %v478_v26 = vpop.f32.mrb[1].mxu0 }
 0x176   : > { %491 = vadd.xlane.f32.xlu1 %v478_v26 }
 0x17a   : > { %493 = vadd.xlane.f32.xlu1 %v860_v25 }
 0x203   : > { %v492_v27 = vpop.xlane.xlu1 %491 }
 0x204   : > { %v496_v28 = vmul.f32 0.0078125, %v492_v27 }
 0x206   : > { %v498_v29 = vsub.f32 %v478_v26, %v496_v28 }
 0x207   : > { %v494_v30 = vpop.xlane.xlu1 %493 }
 0x208   : > { %v497_v31 = vmul.f32 0.0078125, %v494_v30  ;;  %v500_v32 = vmul.f32 %v498_v29, %v498_v29 }
 0x20a   : > { %v499_v33 = vsub.f32 %v860_v25, %v497_v31  ;;  %502 = vadd.xlane.f32.xlu0 %v500_v32  ;;  %v635_v31 = vld [vmem:[%s1069_s19] sm:$0xff] }
 0x20c   : > { %v501_v34 = vmul.f32 %v499_v33, %v499_v33 }
 0x20e   : > { %504 = vadd.xlane.f32.xlu1 %v501_v34  ;;  %v636_v34 = vld [vmem:[%s1069_s19 + $0x8] sm:$0xff] }
 0x21f   : > { %528 = vperm.xlu1 %930, %v489_v35  }
 0x297   : > { %v503_v37 = vpop.xlane.xlu0 %502 }
 0x298   : > { %v506_v38 = vmul.f32 0.0078125, %v503_v37 }
 0x29a   : > { %v508_v41 = vadd.f32 1e-05, %v506_v38 }
 0x29b   : > { %v505_v39 = vpop.xlane.xlu1 %504 }
 0x29c   : > { %v507_v40 = vmul.f32 0.0078125, %v505_v39 }
 0x29e   : > { %v509_v42 = vadd.f32 1e-05, %v507_v40 }
 0x29f   : > { %v529_v50 = vpop.permute.xlu1 %528 }
 0x2a0   : > { %942 = vrsqrt.f32 %v509_v42 }
 0x2a1   : > { %944 = vrsqrt.f32 %v508_v41 }
 0x2aa   : > { %v943_v44 = vpop.eup %942 }
 0x2ab   : > { %v513_v45 = vmul.f32 %v943_v44, %v488_v43  ;;  %v945_v46 = vpop.eup %944 }
 0x2ac   : > { %v512_v48 = vmul.f32 %v945_v46, %v487_v47 }
 0x2ad   : > { %521 = vperm.xlu1 %930, %v513_v45  }
 0x2b1   : > { %516 = vperm.xlu1 %930, %v512_v48  }
 0x2b5   : > { %533 = vperm.xlu1 %930, %v490_v49  }
 0x32c   : > { %v522_v51 = vpop.permute.xlu1 %521 }
 0x32d   : > { %v525_v54 = vmul.f32 %v522_v51, %v499_v33 }
 0x330   : > { %v517_v52 = vpop.permute.xlu1 %516 }
 0x331   : > { %v524_v53 = vmul.f32 %v517_v52, %v498_v29 }
 0x333   : > { %v536_v55 = vadd.f32 %v529_v50, %v524_v53 }
 0x334   : > { %v534_v56 = vpop.permute.xlu1 %533 }
 0x335   : > { %v537_v57 = vadd.f32 %v534_v56, %v525_v54  ;;  %v538_v58 = vmax.f32 %v536_v55, 0.0 }
 0x337   : > { %v539_v59 = vmax.f32 %v537_v57, 0.0 }
 0x339   : > { %v936_v60 = vpack.i.bf16 %v539_v59, %v538_v58  ;;  %v892_v61 = vpack.c.bf16 %v539_v59, %v538_v58 }
 0x33b   : > { %937 = vrot.lane.b32.xlu1 %v936_v60, %s989_s8  ;;  %932 = vrot.lane.b32.xlu0 %v936_v60, %s988_s27 }
 0x3ad   : > { %v938_v63 = vpop.permute.xlu1 %937  ;;  %v933_v0 = vpop.permute.xlu0 %932 }
 0x3ae   : > { %v940_v1 = vunpack.i.h.bf16 %v938_v63  ;;  %v939_v4 = vunpack.i.l.bf16 %v938_v63  ;;  %v935_v5 = vunpack.i.h.bf16 %v933_v0  ;;  %v934_v6 = vunpack.i.l.bf16 %v933_v0 }
 0x3b0   : > { %v550_v7 = vsel %vm1093_vm1, %v939_v4, %v934_v6  ;;  %v551_v8 = vsel %vm1093_vm1, %v940_v1, %v935_v5  ;;  %v552_v10 = vsel %vm1103_vm2, %v934_v6, %v939_v4  ;;  %v553_v12 = vsel %vm1103_vm2, %v935_v5, %v940_v1 }
 0x3b1   : > { %v888_v9 = vpack.c.bf16 %v551_v8, %v550_v7  ;;  %v896_v13 = vpack.c.bf16 %v553_v12, %v552_v10 }
 0x3b3   : > { %889 = vmatprep.subr.bf16.mxu1 %v888_v9 }
 0x3b4   : > { %891 = vmatpush3.bf16.msra.mxu1 %v888_v9 }
 0x3b5   : > { %893 = vmatprep.subr.bf16.mxu1 %v892_v61 }
 0x3b8   : > { %895 = vmatpush3.bf16.msra.mxu1 %v892_v61 }
 0x3b9   : > { %897 = vmatprep.subr.bf16.mxu1 %v896_v13 }
 0x3bc   : > { %899 = vmatpush3.bf16.msra.mxu1 %v896_v13 }
 0x3bf   : > { %874 = vmatmul.mubr.msk.f32.vlgmr.msra.gmra.mrb[0].mxu1 %vm405_vm0, %v541_v14 }
 0x492   : > { %v875_v11 = vpop.f32.mrb[0].mxu1 }
 0x493   : > { %641 = vadd.xlane.f32.xlu0 %v875_v11  ;;  %v626_v15 = vpop.f32.mrb[1].mxu1 }
 0x494   : > { %639 = vadd.xlane.f32.xlu1 %v626_v15 }
 0x520   : > { %v642_v16 = vpop.xlane.xlu0 %641 }
 0x521   : > { %v640_v17 = vpop.xlane.xlu1 %639  ;;  %v644_v18 = vmul.f32 0.0078125, %v642_v16 }
 0x522   : > { %v643_v19 = vmul.f32 0.0078125, %v640_v17 }
 0x523   : > { %v646_v20 = vsub.f32 %v875_v11, %v644_v18 }
 0x524   : > { %v645_v21 = vsub.f32 %v626_v15, %v643_v19 }
 0x525   : > { %v648_v23 = vmul.f32 %v646_v20, %v646_v20 }
 0x526   : > { %v647_v22 = vmul.f32 %v645_v21, %v645_v21 }
 0x528   : > { %649 = vadd.xlane.f32.xlu1 %v647_v22 }
 0x52c   : > { %651 = vadd.xlane.f32.xlu1 %v648_v23 }
 0x53d   : > { %675 = vperm.xlu1 %930, %v637_v24  }
 0x5b5   : > { %v650_v25 = vpop.xlane.xlu1 %649 }
 0x5b6   : > { %v653_v26 = vmul.f32 0.0078125, %v650_v25 }
 0x5b8   : > { %v655_v27 = vadd.f32 1e-05, %v653_v26 }
 0x5b9   : > { %v652_v28 = vpop.xlane.xlu1 %651 }
 0x5ba   : > { %946 = vrsqrt.f32 %v655_v27  ;;  %v654_v29 = vmul.f32 0.0078125, %v652_v28 }
 0x5bc   : > { %v656_v30 = vadd.f32 1e-05, %v654_v29 }
 0x5bd   : > { %v676_v38 = vpop.permute.xlu1 %675 }
 0x5be   : > { %948 = vrsqrt.f32 %v656_v30 }
 0x5c4   : > { %v947_v32 = vpop.eup %946 }
 0x5c5   : > { %v659_v33 = vmul.f32 %v947_v32, %v635_v31 }
 0x5c7   : > { %663 = vperm.xlu1 %930, %v659_v33  }
 0x5c8   : > { %v949_v35 = vpop.eup %948 }
 0x5c9   : > { %v660_v37 = vmul.f32 %v949_v35, %v636_v34 }
 0x5cb   : > { %680 = vperm.xlu1 %930, %v638_v36   ;;  %668 = vperm.xlu0 %941, %v660_v37  }
 0x646   : > { %v664_v39 = vpop.permute.xlu1 %663 }
 0x647   : > { %v671_v40 = vmul.f32 %v664_v39, %v645_v21 }
 0x649   : > { %v683_v41 = vadd.f32 %v676_v38, %v671_v40 }
 0x64a   : > { %v669_v42 = vpop.permute.xlu0 %668  ;;  %v681_v45 = vpop.permute.xlu1 %680 }
 0x64b   : > { %v685_v43 = vadd.f32 %v683_v41, %v1083_v2  ;;  %v672_v44 = vmul.f32 %v669_v42, %v646_v20 }
 0x64d   : > { %v687_v46 = vmax.f32 %v685_v43, 0.0  ;;  %v684_v47 = vadd.f32 %v681_v45, %v672_v44 }
 0x64f   : > { %689 = vst [vmem:[#allocation2] sm:$0xff] %v687_v46  ;;  %v686_v48 = vadd.f32 %v684_v47, %v1085_v3 }
 0x651   : > { %v688_v49 = vmax.f32 %v686_v48, 0.0 }
 0x653   : > { %690 = vst [vmem:[#allocation2 + $0x8] sm:$0xff] %v688_v49 }
 0x654   : > { %963 = shalt.err (!%p960_p12)
}
 0x655   : > { %s964_s13 = scalar_lea.hbm %s1170_s7, 256 }
 0x656   : > { %p965_p13 = scmp.ne.s32.totalorder %s1170_s7, %s964_s13  ;;  %p970_p2 = scmp.lt.u32.totalorder %s964_s13, %s1170_s7 }
 0x658   : > { %p966_p0 = pnand %p965_p13, %p904_p5 }
 0x65a   : > { %p967_p1 = pneg %p966_p0 }
 0x65c   : > { %p972_p3 = pnand %p970_p2, %p967_p1 }
 0x65e   : > { %975 = shalt.err (!%p972_p3)
}
 0x65f   : > { %s992_s18 = smov 128   ;;  %s993_s19 = smov 8  }
 0x660   : > { %901 = dma.vmem_to_hbm [thread:$0]  (%p904_p5), %s698_s9, 256, %s1170_s7, [#allocation3], %s992_s18, %s992_s18, %s993_s19  }
 0x661   : > { %981 = dma.done.wait (%p904_p5), [#allocation3], 256  }
 0x662   : > { %983 = vsyncadd (%p904_p5), [#allocation3], 4294967040 }
 0x663 PF: > { %s18_s24 = sadd.s32 1, %s986_s24  }
 0x664   : > { %p15_p4 = scmp.ge.s32.totalorder %s18_s24, 4  }
 0x666   :  { %17 = sbr.rel (!%p15_p4) target bundleno = 1 (0x1), region = 94 }
 0x66d   :  { %713 = vsyncpa [#allocation3], 1 }
 0x66e   :  { %715 = vsyncpa [#allocation3 + $0x1], 1 }

</bundles_post_ra>
